<compile_context>
chip_gen: v6e
topology: v6e:2x2x1
jax: 0.10.0
libtpu: 0.0.40
codegen_flags: <defaults>
</compile_context>

<pallas_src>
import functools
import math

import jax
import jax.numpy as jnp
from jax.experimental import pallas as pl
from jax.experimental.pallas import tpu as pltpu

LANES = 128        # points per row (lane axis)
SUBLANES = 8       # f32 sublanes per vreg
BLOCK_ROWS = 256   # rows per grid step -> 32768 points / step (~2 MB inputs / step)

_PI = float(math.pi)
_INV_PI = 1.0 / _PI


def _loss_kernel(*refs, disambiguate: bool, has_transform: bool):
    if has_transform:
        t_ref, b_ref, bt_ref, out_ref = refs
    else:
        b_ref, bt_ref, out_ref = refs
        t_ref = None

    @pl.when(pl.program_id(0) == 0)
    def _():
        out_ref[...] = jnp.zeros_like(out_ref)

    bx = b_ref[0].astype(jnp.float32)       # (S, 128)
    by = b_ref[1].astype(jnp.float32)
    bz = b_ref[2].astype(jnp.float32)

    if has_transform:
        # einsum('ijk,ik->ij') unrolled: 9 muls + 6 adds on full (S,128) tiles.
        t0 = t_ref[0].astype(jnp.float32)
        t1 = t_ref[1].astype(jnp.float32)
        t2 = t_ref[2].astype(jnp.float32)
        t3 = t_ref[3].astype(jnp.float32)
        t4 = t_ref[4].astype(jnp.float32)
        t5 = t_ref[5].astype(jnp.float32)
        t6 = t_ref[6].astype(jnp.float32)
        t7 = t_ref[7].astype(jnp.float32)
        t8 = t_ref[8].astype(jnp.float32)
        x = t0 * bx + t1 * by + t2 * bz
        y = t3 * bx + t4 * by + t5 * bz
        z = t6 * bx + t7 * by + t8 * bz
    else:
        x, y, z = bx, by, bz

    # ---- predicted branch: img -> (los,trv,azi) -> img, without atan2/sqrt ----
    if disambiguate:
        # sign = +1 iff atan2(y, x) in [0, pi)
        pos = jnp.logical_or(y > 0.0, jnp.logical_and(y == 0.0, x >= 0.0))
        sign = jnp.where(pos, 1.0, -1.0)
        bx_p = sign * x
        by_p = sign * y
    else:
        bx_p = x
        by_p = y
    # torch path goes through sqrt/atan2: NaN in x or y poisons both components.
    nan_xy = jnp.logical_or(jnp.isnan(x), jnp.isnan(y))
    bx_p = jnp.where(nan_xy, jnp.nan, bx_p)
    by_p = jnp.where(nan_xy, jnp.nan, by_p)
    bz_p = z

    # ---- true branch: (los,trv,azi) -> img ----
    los_t = bt_ref[0].astype(jnp.float32)
    trv_t = bt_ref[1].astype(jnp.float32)
    azi_t = bt_ref[2].astype(jnp.float32)
    if disambiguate:
        # azi % pi with divisor-sign (floor) semantics; reciprocal mult, no EUP div.
        azi_t = azi_t - jnp.floor(azi_t * _INV_PI) * _PI
    bx_t = trv_t * jnp.cos(azi_t)
    by_t = trv_t * jnp.sin(azi_t)
    bz_t = los_t

    # ---- squared diff, nansum over components ----
    dx = bx_p - bx_t
    dy = by_p - by_t
    dz = bz_p - bz_t
    sqx = dx * dx
    sqy = dy * dy
    sqz = dz * dz
    sqx = jnp.where(jnp.isnan(sqx), 0.0, sqx)
    sqy = jnp.where(jnp.isnan(sqy), 0.0, sqy)
    sqz = jnp.where(jnp.isnan(sqz), 0.0, sqz)
    total = sqx + sqy + sqz                               # (S, 128)

    # ---- fold the (S,128) tile into the resident (8,128) accumulator ----
    s_rows = total.shape[0]
    part = total[0:SUBLANES, :]
    for i in range(1, s_rows // SUBLANES):                # pure vreg adds (VPU)
        part = part + total[i * SUBLANES:(i + 1) * SUBLANES, :]
    out_ref[...] += part


def los_trv_azi_boundary_loss(b, b_true, transform=None, disambiguate=True,
                              block_rows=BLOCK_ROWS):
    """b, b_true: (N, 3); transform: (N, 3, 3) or None. Returns scalar loss."""
    n = b.shape[0]
    has_transform = transform is not None

    rows = pl.cdiv(n, LANES)
    s = min(block_rows, pl.cdiv(rows, SUBLANES) * SUBLANES)   # rows/block, multiple of 8
    rows_pad = pl.cdiv(rows, s) * s
    n_pad = rows_pad * LANES
    pad = n_pad - n

    def to_cf(a, c):
        # (N, c) or (N, 3, 3) -> channel-first, lane-packed (c, rows_pad, 128).
        a = jnp.pad(a.astype(jnp.float32).reshape(n, c), ((0, pad), (0, 0)))
        return a.T.reshape(c, rows_pad, LANES)

    in_specs = []
    args = []
    if has_transform:
        in_specs.append(pl.BlockSpec((9, s, LANES), lambda i: (0, i, 0)))
        args.append(to_cf(transform, 9))
    in_specs += [
        pl.BlockSpec((3, s, LANES), lambda i: (0, i, 0)),
        pl.BlockSpec((3, s, LANES), lambda i: (0, i, 0)),
    ]
    args += [to_cf(b, 3), to_cf(b_true, 3)]

    acc = pl.pallas_call(
        functools.partial(_loss_kernel, disambiguate=disambiguate,
                          has_transform=has_transform),
        out_shape=jax.ShapeDtypeStruct((SUBLANES, LANES), jnp.float32),
        grid_spec=pltpu.PrefetchScalarGridSpec(
            num_scalar_prefetch=0,
            grid=(rows_pad // s,),
            in_specs=in_specs,
            out_specs=pl.BlockSpec((SUBLANES, LANES), lambda i: (0, 0)),
        ),
        compiler_params=pltpu.CompilerParams(
            dimension_semantics=("arbitrary",)),
    )(*args)

    # Zero-padded points contribute exactly 0, so sum/n == mean over real points.
    return jnp.sum(acc) / n


# ---------------- pure-JAX reference (faithful torch translation) ----------------
def _reference_loss(b, b_true, transform=None, disambiguate=True):
    if transform is not None:
        b_pred = jnp.einsum('ijk,ik->ij', transform, b,
                            precision=jax.lax.Precision.HIGHEST)
    else:
        b_pred = b
    los = b_pred[..., 2]
    trv = jnp.sqrt(b_pred[..., 0] ** 2 + b_pred[..., 1] ** 2)
    azi = jnp.arctan2(b_pred[..., 1], b_pred[..., 0])
    b_pred_lta = jnp.stack([los, trv, azi], -1)

    def lta_to_img(v):
        l, t, a = v[..., 0], v[..., 1], v[..., 2]
        if disambiguate:
            a = jnp.mod(a, jnp.pi)
        return jnp.stack([t * jnp.cos(a), t * jnp.sin(a), l], -1)

    d = lta_to_img(b_pred_lta) - lta_to_img(b_true)
    return jnp.mean(jnp.nansum(d ** 2, -1))


if __name__ == "__main__":
    key = jax.random.PRNGKey(0)
    k1, k2, k3, k4, k5 = jax.random.split(key, 5)

    N = 200  # exercises padding (rows -> 8, points -> 1024)
    b = jax.random.normal(k1, (N, 3), jnp.float32)
    b = b.at[5, 0].set(jnp.nan)                         # NaN in the image-frame field
    los = jax.random.normal(k2, (N,), jnp.float32)
    trv = jnp.abs(jax.random.normal(k3, (N,), jnp.float32))
    azi = jax.random.uniform(k4, (N,), jnp.float32, -jnp.pi, jnp.pi)
    b_true = jnp.stack([los, trv, azi], -1)             # (los, trv, azi)
    b_true = b_true.at[3, 2].set(jnp.nan).at[17, 1].set(jnp.nan)   # nansum semantics
    transform = jax.random.normal(k5, (N, 3, 3), jnp.float32) * 0.5 + \
        jnp.eye(3, dtype=jnp.float32)[None]

    # with transform, disambiguate=True
    loss = jax.block_until_ready(
        los_trv_azi_boundary_loss(b, b_true, transform, disambiguate=True))
    ref = _reference_loss(b, b_true, transform, disambiguate=True)
    assert jnp.allclose(loss, ref, rtol=1e-3, atol=1e-3), (loss, ref)

    # no-transform fast path
    loss_nt = jax.block_until_ready(
        los_trv_azi_boundary_loss(b, b_true, None, disambiguate=True))
    ref_nt = _reference_loss(b, b_true, None, disambiguate=True)
    assert jnp.allclose(loss_nt, ref_nt, rtol=1e-3, atol=1e-3), (loss_nt, ref_nt)

    # disambiguate=False
    loss_na = jax.block_until_ready(
        los_trv_azi_boundary_loss(b, b_true, transform, disambiguate=False))
    ref_na = _reference_loss(b, b_true, transform, disambiguate=False)
    assert jnp.allclose(loss_na, ref_na, rtol=1e-3, atol=1e-3), (loss_na, ref_na)

    print("KERNEL_OK")
</pallas_src>

<mosaic_0001>
module attributes {stable_mosaic.version = 11 : i64} {
  func.func @_loss_kernel(%arg0: i32, %arg1: memref<9x8x128xf32, #tpu.memory_space<vmem>>, %arg2: memref<3x8x128xf32, #tpu.memory_space<vmem>>, %arg3: memref<3x8x128xf32, #tpu.memory_space<vmem>>, %arg4: memref<8x128xf32, #tpu.memory_space<vmem>>) attributes {dimension_semantics = [#tpu.dimension_semantics<arbitrary>], iteration_bounds = array<i64: 1>, scalar_prefetch = 0 : i64, scratch_operands = 0 : i64, tpu.core_type = #tpu.core_type<tc>, window_params = [{transform_indices = @transform_0, window_bounds = array<i64: 9, 8, 128>}, {transform_indices = @transform_1, window_bounds = array<i64: 3, 8, 128>}, {transform_indices = @transform_2, window_bounds = array<i64: 3, 8, 128>}, {pipeline_mode = #tpu.pipeline_mode<synchronous>, transform_indices = @transform_3, window_bounds = array<i64: 8, 128>}]} {
    %c0_i32 = arith.constant 0 : i32
    %0 = arith.cmpi eq, %arg0, %c0_i32 : i32
    %1 = arith.extui %0 : i1 to i32
    %c0_i32_0 = arith.constant 0 : i32
    %2 = arith.cmpi ne, %1, %c0_i32_0 : i32
    scf.if %2 {
      %cst_52 = arith.constant 0.000000e+00 : f32
      %98 = vector.broadcast %cst_52 : f32 to vector<8x128xf32>
      %c0_53 = arith.constant 0 : index
      %c0_54 = arith.constant 0 : index
      %99 = vector.load %arg4[%c0_53, %c0_54] : memref<8x128xf32, #tpu.memory_space<vmem>>, vector<8x128xf32>
      tpu.vector_store %arg4[%c0_53, %c0_54], %98 {strides = array<i32>} : memref<8x128xf32, #tpu.memory_space<vmem>>, vector<8x128xf32>,
    } else {
    }
    %c0 = arith.constant 0 : index
    %c0_1 = arith.constant 0 : index
    %c0_2 = arith.constant 0 : index
    %3 = vector.load %arg2[%c0, %c0_1, %c0_2] : memref<3x8x128xf32, #tpu.memory_space<vmem>>, vector<1x8x128xf32>
    %4 = vector.shape_cast %3 : vector<1x8x128xf32> to vector<8x128xf32>
    %c1 = arith.constant 1 : index
    %c0_3 = arith.constant 0 : index
    %c0_4 = arith.constant 0 : index
    %5 = vector.load %arg2[%c1, %c0_3, %c0_4] : memref<3x8x128xf32, #tpu.memory_space<vmem>>, vector<1x8x128xf32>
    %6 = vector.shape_cast %5 : vector<1x8x128xf32> to vector<8x128xf32>
    %c2 = arith.constant 2 : index
    %c0_5 = arith.constant 0 : index
    %c0_6 = arith.constant 0 : index
    %7 = vector.load %arg2[%c2, %c0_5, %c0_6] : memref<3x8x128xf32, #tpu.memory_space<vmem>>, vector<1x8x128xf32>
    %8 = vector.shape_cast %7 : vector<1x8x128xf32> to vector<8x128xf32>
    %c0_7 = arith.constant 0 : index
    %c0_8 = arith.constant 0 : index
    %c0_9 = arith.constant 0 : index
    %9 = vector.load %arg1[%c0_7, %c0_8, %c0_9] : memref<9x8x128xf32, #tpu.memory_space<vmem>>, vector<1x8x128xf32>
    %10 = vector.shape_cast %9 : vector<1x8x128xf32> to vector<8x128xf32>
    %c1_10 = arith.constant 1 : index
    %c0_11 = arith.constant 0 : index
    %c0_12 = arith.constant 0 : index
    %11 = vector.load %arg1[%c1_10, %c0_11, %c0_12] : memref<9x8x128xf32, #tpu.memory_space<vmem>>, vector<1x8x128xf32>
    %12 = vector.shape_cast %11 : vector<1x8x128xf32> to vector<8x128xf32>
    %c2_13 = arith.constant 2 : index
    %c0_14 = arith.constant 0 : index
    %c0_15 = arith.constant 0 : index
    %13 = vector.load %arg1[%c2_13, %c0_14, %c0_15] : memref<9x8x128xf32, #tpu.memory_space<vmem>>, vector<1x8x128xf32>
    %14 = vector.shape_cast %13 : vector<1x8x128xf32> to vector<8x128xf32>
    %c3 = arith.constant 3 : index
    %c0_16 = arith.constant 0 : index
    %c0_17 = arith.constant 0 : index
    %15 = vector.load %arg1[%c3, %c0_16, %c0_17] : memref<9x8x128xf32, #tpu.memory_space<vmem>>, vector<1x8x128xf32>
    %16 = vector.shape_cast %15 : vector<1x8x128xf32> to vector<8x128xf32>
    %c4 = arith.constant 4 : index
    %c0_18 = arith.constant 0 : index
    %c0_19 = arith.constant 0 : index
    %17 = vector.load %arg1[%c4, %c0_18, %c0_19] : memref<9x8x128xf32, #tpu.memory_space<vmem>>, vector<1x8x128xf32>
    %18 = vector.shape_cast %17 : vector<1x8x128xf32> to vector<8x128xf32>
    %c5 = arith.constant 5 : index
    %c0_20 = arith.constant 0 : index
    %c0_21 = arith.constant 0 : index
    %19 = vector.load %arg1[%c5, %c0_20, %c0_21] : memref<9x8x128xf32, #tpu.memory_space<vmem>>, vector<1x8x128xf32>
    %20 = vector.shape_cast %19 : vector<1x8x128xf32> to vector<8x128xf32>
    %c6 = arith.constant 6 : index
    %c0_22 = arith.constant 0 : index
    %c0_23 = arith.constant 0 : index
    %21 = vector.load %arg1[%c6, %c0_22, %c0_23] : memref<9x8x128xf32, #tpu.memory_space<vmem>>, vector<1x8x128xf32>
    %22 = vector.shape_cast %21 : vector<1x8x128xf32> to vector<8x128xf32>
    %c7 = arith.constant 7 : index
    %c0_24 = arith.constant 0 : index
    %c0_25 = arith.constant 0 : index
    %23 = vector.load %arg1[%c7, %c0_24, %c0_25] : memref<9x8x128xf32, #tpu.memory_space<vmem>>, vector<1x8x128xf32>
    %24 = vector.shape_cast %23 : vector<1x8x128xf32> to vector<8x128xf32>
    %c8 = arith.constant 8 : index
    %c0_26 = arith.constant 0 : index
    %c0_27 = arith.constant 0 : index
    %25 = vector.load %arg1[%c8, %c0_26, %c0_27] : memref<9x8x128xf32, #tpu.memory_space<vmem>>, vector<1x8x128xf32>
    %26 = vector.shape_cast %25 : vector<1x8x128xf32> to vector<8x128xf32>
    %27 = arith.mulf %10, %4 : vector<8x128xf32>
    %28 = arith.mulf %12, %6 : vector<8x128xf32>
    %29 = arith.addf %27, %28 : vector<8x128xf32>
    %30 = arith.mulf %14, %8 : vector<8x128xf32>
    %31 = arith.addf %29, %30 : vector<8x128xf32>
    %32 = arith.mulf %16, %4 : vector<8x128xf32>
    %33 = arith.mulf %18, %6 : vector<8x128xf32>
    %34 = arith.addf %32, %33 : vector<8x128xf32>
    %35 = arith.mulf %20, %8 : vector<8x128xf32>
    %36 = arith.addf %34, %35 : vector<8x128xf32>
    %37 = arith.mulf %22, %4 : vector<8x128xf32>
    %38 = arith.mulf %24, %6 : vector<8x128xf32>
    %39 = arith.addf %37, %38 : vector<8x128xf32>
    %40 = arith.mulf %26, %8 : vector<8x128xf32>
    %41 = arith.addf %39, %40 : vector<8x128xf32>
    %cst = arith.constant 0.000000e+00 : f32
    %42 = vector.broadcast %cst : f32 to vector<8x128xf32>
    %43 = arith.cmpf ogt, %36, %42 : vector<8x128xf32>
    %cst_28 = arith.constant 0.000000e+00 : f32
    %44 = vector.broadcast %cst_28 : f32 to vector<8x128xf32>
    %45 = arith.cmpf oeq, %36, %44 : vector<8x128xf32>
    %cst_29 = arith.constant 0.000000e+00 : f32
    %46 = vector.broadcast %cst_29 : f32 to vector<8x128xf32>
    %47 = arith.cmpf oge, %31, %46 : vector<8x128xf32>
    %48 = arith.andi %45, %47 : vector<8x128xi1>
    %49 = arith.ori %43, %48 : vector<8x128xi1>
    %cst_30 = arith.constant 1.000000e+00 : f32
    %cst_31 = arith.constant -1.000000e+00 : f32
    %50 = vector.broadcast %cst_30 : f32 to vector<8x128xf32>
    %51 = vector.broadcast %cst_31 : f32 to vector<8x128xf32>
    %52 = arith.select %49, %50, %51 : vector<8x128xi1>, vector<8x128xf32>
    %53 = arith.mulf %52, %31 : vector<8x128xf32>
    %54 = arith.mulf %52, %36 : vector<8x128xf32>
    %55 = arith.cmpf one, %31, %31 : vector<8x128xf32>
    %56 = arith.cmpf one, %36, %36 : vector<8x128xf32>
    %57 = arith.ori %55, %56 : vector<8x128xi1>
    %cst_32 = arith.constant 0x7FC00000 : f32
    %58 = vector.broadcast %cst_32 : f32 to vector<8x128xf32>
    %59 = arith.select %57, %58, %53 : vector<8x128xi1>, vector<8x128xf32>
    %cst_33 = arith.constant 0x7FC00000 : f32
    %60 = vector.broadcast %cst_33 : f32 to vector<8x128xf32>
    %61 = arith.select %57, %60, %54 : vector<8x128xi1>, vector<8x128xf32>
    %c0_34 = arith.constant 0 : index
    %c0_35 = arith.constant 0 : index
    %c0_36 = arith.constant 0 : index
    %62 = vector.load %arg3[%c0_34, %c0_35, %c0_36] : memref<3x8x128xf32, #tpu.memory_space<vmem>>, vector<1x8x128xf32>
    %63 = vector.shape_cast %62 : vector<1x8x128xf32> to vector<8x128xf32>
    %c1_37 = arith.constant 1 : index
    %c0_38 = arith.constant 0 : index
    %c0_39 = arith.constant 0 : index
    %64 = vector.load %arg3[%c1_37, %c0_38, %c0_39] : memref<3x8x128xf32, #tpu.memory_space<vmem>>, vector<1x8x128xf32>
    %65 = vector.shape_cast %64 : vector<1x8x128xf32> to vector<8x128xf32>
    %c2_40 = arith.constant 2 : index
    %c0_41 = arith.constant 0 : index
    %c0_42 = arith.constant 0 : index
    %66 = vector.load %arg3[%c2_40, %c0_41, %c0_42] : memref<3x8x128xf32, #tpu.memory_space<vmem>>, vector<1x8x128xf32>
    %67 = vector.shape_cast %66 : vector<1x8x128xf32> to vector<8x128xf32>
    %cst_43 = arith.constant 0.318309873 : f32
    %68 = vector.broadcast %cst_43 : f32 to vector<8x128xf32>
    %69 = arith.mulf %67, %68 : vector<8x128xf32>
    %70 = math.floor %69 : vector<8x128xf32>
    %cst_44 = arith.constant 3.14159274 : f32
    %71 = vector.broadcast %cst_44 : f32 to vector<8x128xf32>
    %72 = arith.mulf %70, %71 : vector<8x128xf32>
    %73 = arith.subf %67, %72 : vector<8x128xf32>
    %74 = math.cos %73 : vector<8x128xf32>
    %75 = arith.mulf %65, %74 : vector<8x128xf32>
    %76 = math.sin %73 : vector<8x128xf32>
    %77 = arith.mulf %65, %76 : vector<8x128xf32>
    %78 = arith.subf %59, %75 : vector<8x128xf32>
    %79 = arith.subf %61, %77 : vector<8x128xf32>
    %80 = arith.subf %41, %63 : vector<8x128xf32>
    %81 = arith.mulf %78, %78 : vector<8x128xf32>
    %82 = arith.mulf %79, %79 : vector<8x128xf32>
    %83 = arith.mulf %80, %80 : vector<8x128xf32>
    %84 = arith.cmpf one, %81, %81 : vector<8x128xf32>
    %cst_45 = arith.constant 0.000000e+00 : f32
    %85 = vector.broadcast %cst_45 : f32 to vector<8x128xf32>
    %86 = arith.select %84, %85, %81 : vector<8x128xi1>, vector<8x128xf32>
    %87 = arith.cmpf one, %82, %82 : vector<8x128xf32>
    %cst_46 = arith.constant 0.000000e+00 : f32
    %88 = vector.broadcast %cst_46 : f32 to vector<8x128xf32>
    %89 = arith.select %87, %88, %82 : vector<8x128xi1>, vector<8x128xf32>
    %90 = arith.cmpf one, %83, %83 : vector<8x128xf32>
    %cst_47 = arith.constant 0.000000e+00 : f32
    %91 = vector.broadcast %cst_47 : f32 to vector<8x128xf32>
    %92 = arith.select %90, %91, %83 : vector<8x128xi1>, vector<8x128xf32>
    %93 = arith.addf %86, %89 : vector<8x128xf32>
    %94 = arith.addf %93, %92 : vector<8x128xf32>
    %c0_48 = arith.constant 0 : index
    %c0_49 = arith.constant 0 : index
    %95 = vector.load %arg4[%c0_48, %c0_49] : memref<8x128xf32, #tpu.memory_space<vmem>>, vector<8x128xf32>
    %96 = arith.addf %95, %94 : vector<8x128xf32>
    %c0_50 = arith.constant 0 : index
    %c0_51 = arith.constant 0 : index
    %97 = vector.load %arg4[%c0_50, %c0_51] : memref<8x128xf32, #tpu.memory_space<vmem>>, vector<8x128xf32>
    tpu.vector_store %arg4[%c0_50, %c0_51], %96 {strides = array<i32>} : memref<8x128xf32, #tpu.memory_space<vmem>>, vector<8x128xf32>,
    return
  }
  func.func @transform_0(%arg0: i32) -> (i32, i32, i32) {
    %c0_i32 = arith.constant 0 : i32
    %c0_i32_0 = arith.constant 0 : i32
    %c0_i32_1 = arith.constant 0 : i32
    return %c0_i32, %arg0, %c0_i32_0 : i32, i32, i32
  }
  func.func @transform_1(%arg0: i32) -> (i32, i32, i32) {
    %c0_i32 = arith.constant 0 : i32
    %c0_i32_0 = arith.constant 0 : i32
    %c0_i32_1 = arith.constant 0 : i32
    return %c0_i32, %arg0, %c0_i32_0 : i32, i32, i32
  }
  func.func @transform_2(%arg0: i32) -> (i32, i32, i32) {
    %c0_i32 = arith.constant 0 : i32
    %c0_i32_0 = arith.constant 0 : i32
    %c0_i32_1 = arith.constant 0 : i32
    return %c0_i32, %arg0, %c0_i32_0 : i32, i32, i32
  }
  func.func @transform_3(%arg0: i32) -> (i32, i32) {
    %c0_i32 = arith.constant 0 : i32
    %c0_i32_0 = arith.constant 0 : i32
    %c0_i32_1 = arith.constant 0 : i32
    return %c0_i32, %c0_i32_0 : i32, i32
  }
}

</mosaic_0001>

<bundles_post_ra>
// kernel: tpu_custom_call.1
= control target key start
LH: loop header
LB: loop body
LE: loop exit
PB: predicated region body
PF: predicated region fallthrough
CT: control target
= control target key end

     0   :  { %8 = vsyncpa [#allocation3], 0  ;;  %s552_s0 = inlined_call_operand.hbm [shape: f32[9,8,128], index: 0, kind: input, shape index: {}]   ;;  %s553_s1 = inlined_call_operand.hbm [shape: f32[3,8,128], index: 1, kind: input, shape index: {}]   ;;  %s554_s2 = inlined_call_operand.hbm [shape: f32[3,8,128], index: 2, kind: input, shape index: {}]   ;;  %s555_s3 = inlined_call_operand.hbm [shape: f32[8,128], index: 3, kind: output, shape index: {}]  }
   0x1   :  { %9 = vsyncpa [#allocation6], 0 }
   0x2   :  { %10 = vsyncpa [#allocation4], 0  ;;  %s478_s12 = smov [#allocation5]   ;;  %s479_s14 = smov [#allocation2]  }
   0x3   :  { %s28_s13 = sshll.u32 %s478_s12, 4  ;;  %s16_s15 = sshll.u32 %s479_s14, 4  ;;  %s29_s13 = int_to_ptr.vmem [resolvable:$true] %s28_s13  ;;  %s17_s15 = int_to_ptr.vmem [resolvable:$true] %s16_s15 }
   0x4   :  { %s400_s16 = scalar_lea.vmem %s29_s13, 384  ;;  %p405_p1 = scmp.lt.s32.totalorder %s29_s13, %s29_s13 }
   0x5   :  { %p401_p0 = scmp.ne.s32.totalorder %s29_s13, %s400_s16  ;;  %p406_p2 = scmp.lt.s32.totalorder %s400_s16, %s400_s16 }
   0x7   :  { %p407_p3 = por %p406_p2, %p405_p1 }
   0x9   :  { %p408_p4 = pnand %p407_p3, %p401_p0 }
   0xb   :  { %411 = shalt.err (!%p408_p4)
}
   0xc   :  { %s480_s17 = smov 128   ;;  %s481_s18 = smov 8  }
   0xd   :  { %34 = dma.hbm_to_vmem [thread:$0]  %s553_s1, 384, %s29_s13, [#allocation6], %s480_s17, %s480_s17, %s481_s18  }
   0xe   :  { %s420_s21 = scalar_lea.vmem %s17_s15, 1152  ;;  %p425_p6 = scmp.lt.s32.totalorder %s17_s15, %s17_s15 }
   0xf   :  { %p421_p5 = scmp.ne.s32.totalorder %s17_s15, %s420_s21  ;;  %p426_p7 = scmp.lt.s32.totalorder %s420_s21, %s420_s21 }
  0x11   :  { %p427_p8 = por %p426_p7, %p425_p6 }
  0x13   :  { %p428_p9 = pnand %p427_p8, %p421_p5 }
  0x15   :  { %431 = shalt.err (!%p428_p9)
}
  0x16   :  { %22 = dma.hbm_to_vmem [thread:$0]  %s552_s0, 1152, %s17_s15, [#allocation3], %s480_s17, %s480_s17, %s481_s18  }
  0x17   :  { %s482_s24 = smov [#allocation7]  }
  0x18   :  { %s40_s25 = sshll.u32 %s482_s24, 4  ;;  %s41_s25 = int_to_ptr.vmem [resolvable:$true] %s40_s25 }
  0x19   :  { %s440_s26 = scalar_lea.vmem %s41_s25, 384  ;;  %p445_p11 = scmp.lt.s32.totalorder %s41_s25, %s41_s25 }
  0x1a   :  { %p441_p10 = scmp.ne.s32.totalorder %s41_s25, %s440_s26  ;;  %p446_p12 = scmp.lt.s32.totalorder %s440_s26, %s440_s26 }
  0x1c   :  { %p447_p13 = por %p446_p12, %p445_p11 }
  0x1e   :  { %p448_p0 = pnand %p447_p13, %p441_p10 }
  0x20   :  { %451 = shalt.err (!%p448_p0)
}
  0x21   :  { %46 = dma.hbm_to_vmem [thread:$0]  %s554_s2, 384, %s41_s25, [#allocation6], %s480_s17, %s480_s17, %s481_s18  }
  0x22   :  { %472 = dma.done.wait [#allocation3], 1152  }
  0x23   :  { %473 = vsyncadd [#allocation3], 4294966144 }
  0x24   :  { %474 = dma.done.wait [#allocation6], 768  }
  0x25   :  { %475 = vsyncadd [#allocation6], 4294966528  ;;  %v115_v0 = vld [vmem:[#allocation7 + $0x10] sm:$0xff]  ;;  %v483_v16 = vmov 683565275   ;;  %s490_s0 = smov [#allocation8]  }
  0x26   :  { %v116_v1 = vmul.f32 0.31830987, %v115_v0  ;;  %v484_v18 = vmov 2475754826   ;;  %v485_v20 = vmov 2131351028  }
  0x27   :  { %v486_v22 = vmov 2102212464   ;;  %v487_v24 = vmov 920167782   ;;  %v488_v31 = vmov 1326507024  }
  0x28   :  { %v117_v2 = vfloor.f32 %v116_v1  ;;  %s352_s2 = sshll.u32 %s490_s0, 4  ;;  %s353_s2 = int_to_ptr.vmem [resolvable:$true] %s352_s2 }
  0x29   :  { %s452_s28 = scalar_lea.vmem %s353_s2, 128  ;;  %p457_p2 = scmp.lt.s32.totalorder %s353_s2, %s353_s2 }
  0x2a   :  { %v118_v3 = vmul.f32 3.1415927, %v117_v2  ;;  %p453_p1 = scmp.ne.s32.totalorder %s353_s2, %s452_s28  ;;  %p458_p3 = scmp.lt.s32.totalorder %s452_s28, %s452_s28 }
  0x2c   :  { %v520_v4 = vsub.f32 %v115_v0, %v118_v3  ;;  %p459_p4 = por %p458_p3, %p457_p2 }
  0x2e   :  { %v123_v5 = vand.u32 2139095040, %v520_v4  ;;  %v120_v7 = vand.u32 2147483647, %v520_v4  ;;  %vm122_vm7 = vcmp.lt.s32.totalorder %v520_v4, 0  ;;  %p460_p5 = pnand %p459_p4, %p453_p1 }
  0x30   :  { %v124_v6 = vshrl.u32 %v123_v5, 23  ;;  %v127_v10 = vand.u32 8388607, %v120_v7  ;;  %vm121_vm8 = vcmp.le.f32.partialorder %v120_v7, 0.7853982 }
  0x32   :  { %v362_v8 = vadd.s32 4294967169, %v124_v6  ;;  %v128_v13 = vor.u32 8388608, %v127_v10  ;;  %v61_v10 = vld [vmem:[#allocation5] sm:$0xff] }
  0x34   :  { %v130_v9 = vadd.s32 1, %v362_v8  ;;  %v168_v33 = vshll.u32 %v128_v13, 8  ;;  %v68_v13 = vld [vmem:[#allocation2 + $0x8] sm:$0xff] }
  0x36   :  { %vm131_vm0 = vcmp.gt.s32.totalorder %v130_v9, 0 }
  0x37   :  { %v132_v11 = vsel %vm131_vm0, %v130_v9, 0 }
  0x38   :  { %v134_v12 = vand.u32 31, %v132_v11  ;;  %v133_v14 = vshrl.u32 %v132_v11, 5  ;;  %v63_v11 = vld [vmem:[#allocation5 + $0x8] sm:$0xff] }
  0x3a   :  { %v135_v15 = vsub.s32 32, %v134_v12  ;;  %v137_v17 = vshll.u32 %v483_v16, %v134_v12  ;;  %v140_v19 = vshll.u32 %v484_v18, %v134_v12  ;;  %v143_v21 = vshll.u32 %v485_v20, %v134_v12 }
  0x3b   :  { %v146_v23 = vshll.u32 %v486_v22, %v134_v12  ;;  %v149_v25 = vshll.u32 %v487_v24, %v134_v12  ;;  %vm152_vm1 = vcmp.lt.s32.totalorder %v133_v14, 1  ;;  %vm155_vm2 = vcmp.lt.s32.totalorder %v133_v14, 4  ;;  %v66_v12 = vld [vmem:[#allocation2] sm:$0xff] }
  0x3c   :  { %v136_v26 = vshrl.u32 %v483_v16, %v135_v15  ;;  %v138_v27 = vshrl.u32 %v484_v18, %v135_v15  ;;  %v141_v28 = vshrl.u32 %v485_v20, %v135_v15  ;;  %v144_v29 = vshrl.u32 %v486_v22, %v135_v15  ;;  %v72_v16 = vld [vmem:[#allocation2 + $0x18] sm:$0xff] }
  0x3d   :  { %v147_v30 = vshrl.u32 %v487_v24, %v135_v15  ;;  %v150_v32 = vshrl.u32 %v488_v31, %v135_v15  ;;  %vm153_vm3 = vcmp.lt.s32.totalorder %v133_v14, 2  ;;  %vm154_vm4 = vcmp.lt.s32.totalorder %v133_v14, 3  ;;  %v65_v22 = vld [vmem:[#allocation5 + $0x10] sm:$0xff] }
  0x3e   :  { %v139_v34 = vor.u32 %v138_v27, %v137_v17  ;;  %v142_v35 = vor.u32 %v141_v28, %v140_v19  ;;  %v145_v36 = vor.u32 %v144_v29, %v143_v21  ;;  %v74_v17 = vld [vmem:[#allocation2 + $0x20] sm:$0xff]  ;;  %v83_v20 = vmul.f32 %v66_v12, %v61_v10  ;;  %v76_v28 = vld [vmem:[#allocation2 + $0x28] sm:$0xff] }
  0x3f   :  { %v148_v37 = vor.u32 %v147_v30, %v146_v23  ;;  %v151_v38 = vor.u32 %v150_v32, %v149_v25  ;;  %v84_v21 = vmul.f32 %v68_v13, %v63_v11  ;;  %v70_v23 = vld [vmem:[#allocation2 + $0x10] sm:$0xff]  ;;  %v88_v24 = vmul.f32 %v72_v16, %v61_v10 }
  0x40   :  { %v156_v39 = vsel %vm152_vm1, %v136_v26, %v139_v34  ;;  %v157_v40 = vsel %vm155_vm2, %v145_v36, 2102212464  ;;  %v160_v41 = vsel %vm152_vm1, %v139_v34, %v142_v35  ;;  %v164_v42 = vsel %vm152_vm1, %v142_v35, %v145_v36 }
  0x41   :  { %v158_v43 = vsel %vm154_vm4, %v142_v35, %v157_v40  ;;  %v161_v44 = vsel %vm155_vm2, %v148_v37, 920167782  ;;  %v165_v45 = vsel %vm155_vm2, %v151_v38, 1326507024  ;;  %v89_v25 = vmul.f32 %v74_v17, %v63_v11 }
  0x42   :  { %v162_v46 = vsel %vm154_vm4, %v145_v36, %v161_v44  ;;  %v166_v47 = vsel %vm154_vm4, %v148_v37, %v165_v45  ;;  %v159_v48 = vsel %vm153_vm3, %v156_v39, %v158_v43  ;;  %v86_v30 = vmul.f32 %v70_v23, %v65_v22  ;;  %v80_v43 = vld [vmem:[#allocation2 + $0x38] sm:$0xff] }
  0x43   :  { %v163_v49 = vsel %vm153_vm3, %v160_v41, %v162_v46  ;;  %v167_v50 = vsel %vm153_vm3, %v164_v42, %v166_v47  ;;  %v175_v55 = vmul.u32 %v168_v33, %v159_v48  ;;  %v85_v31 = vadd.f32 %v84_v21, %v83_v20  ;;  %v78_v42 = vld [vmem:[#allocation2 + $0x30] sm:$0xff]  ;;  %v82_v47 = vld [vmem:[#allocation2 + $0x40] sm:$0xff] }
  0x44   :  { %v526_v51 = vmul.u32.u64.low %v168_v33, %v167_v50  ;;  %v527_v52 = vmul.u32.u64.high %v168_v33, %v167_v50, %v526_v51  ;;  %v529_v53 = vmul.u32.u64.low %v168_v33, %v163_v49  ;;  %v530_v54 = vmul.u32.u64.high %v168_v33, %v163_v49, %v529_v53 }
  0x45   :  { %v90_v32 = vadd.f32 %v89_v25, %v88_v24  ;;  %v91_v33 = vmul.f32 %v76_v28, %v65_v22  ;;  %v87_v37 = vadd.f32 %v86_v30, %v85_v31  ;;  %v93_v45 = vmul.f32 %v78_v42, %v61_v10 }
  0x46   :  { %vm177_vm5 = vc.u32 %v527_v52, %v529_v53  ;;  %v178_v56 = vadd.s32 1, %v530_v54  ;;  %v176_v3 = vadd.s32 %v529_v53, %v527_v52  ;;  %v94_v46 = vmul.f32 %v80_v43, %v63_v11 }
  0x47   :  { %v92_v38 = vadd.f32 %v91_v33, %v90_v32  ;;  %vm100_vm10 = vcmp.ge.f32.partialorder %v87_v37, 0.0  ;;  %v96_v49 = vmul.f32 %v82_v47, %v65_v22  ;;  %v489_v52 = vmov -1.0  }
  0x48   :  { %v179_v57 = vsel %vm177_vm5, %v178_v56, %v530_v54  ;;  %v95_v48 = vadd.f32 %v94_v46, %v93_v45  ;;  %vm106_vm14 = vcmp.ne.f32.partialorder %v87_v37, %v87_v37  ;;  %v111_v56 = vld [vmem:[#allocation7] sm:$0xff] }
  0x49   :  { %v180_v58 = vadd.s32 %v179_v57, %v175_v55  ;;  %vm99_vm9 = vcmp.eq.f32.partialorder %v92_v38, 0.0  ;;  %vm98_vm11 = vcmp.gt.f32.partialorder %v92_v38, 0.0  ;;  %vm107_vm15 = vcmp.ne.f32.partialorder %v92_v38, %v92_v38 }
  0x4a   :  { %vm101_vm12 = vmand %vm99_vm9, %vm100_vm10  ;;  %v97_v54 = vadd.f32 %v96_v49, %v95_v48 }
  0x4b   :  { %v181_v59 = vadd.s32 536870912, %v180_v58  ;;  %vm102_vm13 = vmor %vm98_vm11, %vm101_vm12 }
  0x4c   :  { %v103_v53 = vsel %vm102_vm13, 1.0, %v489_v52 }
  0x4d   :  { %v182_v60 = vshrl.u32 %v181_v59, 30 }
  0x4f   :  { %v183_v61 = vshll.u32 %v182_v60, 30  ;;  %v206_v35 = vsub.s32 4, %v182_v60 }
  0x51   :  { %v184_v62 = vsub.s32 %v180_v58, %v183_v61  ;;  %v207_v40 = vsel %vm122_vm7, %v206_v35, %v182_v60  ;;  %v104_v58 = vmul.f32 %v103_v53, %v87_v37  ;;  %v105_v60 = vmul.f32 %v103_v53, %v92_v38 }
  0x52   :  { %v209_v44 = vsel %vm121_vm8, 0, %v207_v40 }
  0x53   :  { %v186_v63 = vsub.s32 0, %v184_v62  ;;  %v317_v7 = vadd.s32 3, %v209_v44  ;;  %v213_v50 = vand.u32 3, %v209_v44 }
  0x55   :  { %v363_v0 = vmin.u32 %v186_v63, %v184_v62  ;;  %v318_v51 = vand.u32 3, %v317_v7  ;;  %vm218_vm0 = vcmp.eq.s32.totalorder %v213_v50, 2  ;;  %vm215_vm2 = vcmp.eq.s32.totalorder %v213_v50, 0 }
  0x56   :  { %vm214_vm4 = vcmp.lt.s32.totalorder %v213_v50, 2 }
  0x57   :  { %v188_v1 = vclz %v363_v0  ;;  %vm323_vm1 = vcmp.eq.s32.totalorder %v318_v51, 2  ;;  %vm320_vm3 = vcmp.eq.s32.totalorder %v318_v51, 0  ;;  %vm319_vm5 = vcmp.lt.s32.totalorder %v318_v51, 2 }
  0x59   :  { %v364_v2 = vadd.s32 4294967294, %v188_v1  ;;  %v331_v1 = vsub.f32 %v97_v54, %v111_v56 }
  0x5b   :  { %vm365_vm6 = vcmp.lt.s32.totalorder %v364_v2, 0 }
  0x5c   :  { %v191_v5 = vsel %vm365_vm6, 0, %v364_v2  ;;  %vm540_vm6 = vmor %vm106_vm14, %vm107_vm15  ;;  %v113_v2 = vld [vmem:[#allocation7 + $0x8] sm:$0xff] }
  0x5d   :  { %v192_v6 = vsub.s32 32, %v191_v5  ;;  %v193_v8 = vshll.u32 %v184_v62, %v191_v5  ;;  %v196_v9 = vsub.s32 4294967266, %v191_v5  ;;  %v110_v10 = vsel %vm540_vm6, nan, %v105_v60 }
  0x5f   :  { %v194_v14 = vshrl.u32 %v176_v3, %v192_v6  ;;  %v197_v15 = vadd.s32 127, %v196_v9  ;;  %v109_v9 = vsel %vm540_vm6, nan, %v104_v58 }
  0x61   :  { %v195_v18 = vor.u32 %v194_v14, %v193_v8  ;;  %v198_v19 = vshll.u32 %v197_v15, 23  ;;  %v334_v15 = vmul.f32 %v331_v1, %v331_v1 }
  0x63   :  { %v199_v26 = vor.u32 4788187, %v198_v19  ;;  %v202_v27 = vcvt.s32.f32 %v195_v18 }
  0x65   :  { %v200_v29 = vand.u32 2147483647, %v199_v26 }
  0x67   :  { %v203_v34 = vmul.f32 %v202_v27, %v200_v29 }
  0x69   :  { %v204_v36 = vxor.u32 2147483648, %v203_v34 }
  0x6b   :  { %v205_v39 = vsel %vm122_vm7, %v204_v36, %v203_v34  ;;  %vm212_vm7 = vweird.f32 %v520_v4 }
  0x6c   :  { %v208_v41 = vsel %vm121_vm8, %v520_v4, %v205_v39  ;;  %vm339_vm8 = vcmp.ne.f32.partialorder %v334_v15, %v334_v15 }
  0x6d   :  { %388 = vcosq.f32 %v208_v41  ;;  %v340_v21 = vsel %vm339_vm8, 0.0, %v334_v15 }
  0x6e   :  { %390 = vsinq.f32 %v208_v41 }
  0x7a   :  { %v389_v55 = vpop.eup %388 }
  0x7b   :  { %v391_v57 = vpop.eup %390  ;;  %v219_v59 = vxor.u32 2147483648, %v389_v55 }
  0x7c   :  { %v216_v61 = vxor.u32 2147483648, %v391_v57 }
  0x7d   :  { %v220_v63 = vsel %vm218_vm0, %v219_v59, %v391_v57  ;;  %v325_v0 = vsel %vm323_vm1, %v219_v59, %v391_v57 }
  0x7e   :  { %v217_v3 = vsel %vm215_vm2, %v389_v55, %v216_v61  ;;  %v322_v5 = vsel %vm320_vm3, %v389_v55, %v216_v61 }
  0x7f   :  { %v221_v6 = vsel %vm214_vm4, %v217_v3, %v220_v63  ;;  %v326_v8 = vsel %vm319_vm5, %v322_v5, %v325_v0 }
  0x80   :  { %v222_v11 = vsel %vm212_vm7, nan, %v221_v6  ;;  %v327_v12 = vsel %vm212_vm7, nan, %v326_v8 }
  0x81   :  { %v223_v13 = vmul.f32 %v222_v11, %v113_v2  ;;  %v328_v14 = vmul.f32 %v327_v12, %v113_v2 }
  0x83   :  { %v329_v4 = vsub.f32 %v109_v9, %v223_v13  ;;  %v330_v16 = vsub.f32 %v110_v10, %v328_v14 }
  0x85   :  { %v332_v17 = vmul.f32 %v329_v4, %v329_v4  ;;  %v333_v18 = vmul.f32 %v330_v16, %v330_v16 }
  0x87   :  { %vm335_vm9 = vcmp.ne.f32.partialorder %v332_v17, %v332_v17  ;;  %vm337_vm10 = vcmp.ne.f32.partialorder %v333_v18, %v333_v18 }
  0x88   :  { %v336_v19 = vsel %vm335_vm9, 0.0, %v332_v17  ;;  %v338_v20 = vsel %vm337_vm10, 0.0, %v333_v18 }
  0x89   :  { %v341_v22 = vadd.f32 %v338_v20, %v336_v19 }
  0x8b   :  { %v342_v23 = vadd.f32 %v341_v22, %v340_v21 }
  0x8d   :  { %345 = vst [vmem:[#allocation8] sm:$0xff] %v342_v23 }
  0x8e   :  { %463 = shalt.err (!%p460_p5)
}
  0x8f   :  { %355 = dma.vmem_to_hbm [thread:$0]  %s353_s2, 128, %s555_s3, [#allocation4]  }
  0x90   :  { %476 = dma.done.wait [#allocation4], 128  }
  0x91   :  { %477 = vsyncadd [#allocation4], 4294967168 }
  0x92   :  { %359 = vsyncpa [#allocation3], 1 }
  0x93   :  { %360 = vsyncpa [#allocation6], 1 }
  0x94   :  { %361 = vsyncpa [#allocation4], 1 }

</bundles_post_ra>
